<compile_context>
chip_gen: v5e
topology: v5e:2x2
jax: 0.10.0
libtpu: 0.0.40
codegen_flags: <defaults>
</compile_context>

<pallas_src>
import functools

import jax
import jax.numpy as jnp
from jax.experimental import pallas as pl
from jax.experimental.pallas import tpu as pltpu


_LANE = 128
# Double-buffered budget for all pipelined blocks (x + S + out).
_BLOCK_VMEM_BUDGET = 28 * 1024 * 1024
_MIB = 1024 * 1024


def _cdiv(a, b):
    return -(-a // b)


def _round_up(n, m):
    return ((n + m - 1) // m) * m


def _sublane_tile(dtype):
    # Native sublane tile: f32 -> 8, bf16 -> 16, int8/fp8 -> 32.
    return max(8, 32 // jnp.dtype(dtype).itemsize)


def _vmem_limit(used_bytes):
    # Enough for our (padded, double-buffered) blocks plus headroom for
    # compiler scratch; capped well below v7x's 64 MiB physical VMEM.
    return int(min(48 * _MIB, max(32 * _MIB, used_bytes + 16 * _MIB)))


# ----------------------------------------------------------------------------
# Kernels
# ----------------------------------------------------------------------------
def _mask_kernel_3d(x_ref, s_ref, o_ref, *, value, append, num_channels):
    # x_ref: (C, Ts, 128), s_ref: (Ts, 128), o_ref: (C[+1], Ts, 128).
    x = x_ref[...]
    s = s_ref[...]
    sb = s[None, :, :]                       # broadcast over channels in-kernel
    masked = x * sb + value * (1.0 - sb)     # exact reference arithmetic
    if append:
        o_ref[:num_channels] = masked
        o_ref[num_channels:num_channels + 1] = sb
    else:
        o_ref[...] = masked


def _mask_kernel_2d(x_ref, s_ref, o_ref, *, value, append, num_channels):
    # x_ref: (C, T), s_ref: (1, T), o_ref: (C[+1], T) -- lane-dense along T.
    # Ragged last spatial block reads padded/garbage lanes; this is safe
    # because Pallas never writes back the out-of-bounds region.
    x = x_ref[...]
    s = s_ref[...]
    masked = x * s + value * (1.0 - s)       # exact reference arithmetic
    if append:
        o_ref[:num_channels, :] = masked
        o_ref[num_channels:num_channels + 1, :] = s
    else:
        o_ref[...] = masked


# ----------------------------------------------------------------------------
# Wrapper
# ----------------------------------------------------------------------------
def mask_layer_2d(x, S, *, value, append, donate_x=False):
    """Pallas implementation of MaskLayer2d.forward((x, S)). Float x only."""
    if S.ndim == 3:                          # (B, H, W) -> (B, 1, H, W)
        S = S[:, None, :, :]
    S = S.astype(x.dtype)

    B, C, H, W = x.shape
    out_c = C + 1 if append else C
    spatial = H * W
    itemsize = jnp.dtype(x.dtype).itemsize
    st = _sublane_tile(x.dtype)
    value = float(value)

    # Only alias x->out when the caller explicitly donates x (append=False):
    # saves a full B*C*H*W HBM allocation.
    io_alias = {0: 0} if (donate_x and not append) else {}

    if spatial % _LANE == 0:
        # ---------------- 3-D dense-tile path ----------------
        n128 = spatial // _LANE

        # Largest sublane-aligned Ts whose double-buffered blocks fit budget.
        row_bytes = (C + 1 + out_c) * _LANE * itemsize
        max_ts = _BLOCK_VMEM_BUDGET // (2 * row_bytes)
        max_ts = max(st, (max_ts // st) * st)
        ts = n128 if n128 <= max_ts else max_ts
        if B == 1:
            # Guarantee >= 2 spatial blocks so both v7x TCs get work.
            half = _round_up(_cdiv(n128, 2), st)
            if half < n128:
                ts = min(ts, half)
        n_sp = _cdiv(n128, ts)

        pad_ts = _round_up(ts, st)
        used = 2 * (C + 1 + out_c) * pad_ts * _LANE * itemsize

        # Trailing-dim reshapes: bitcast in the default NCHW layout (no copy).
        x3 = x.reshape(B, C, n128, _LANE)
        s3 = S.reshape(B, n128, _LANE)

        kernel = functools.partial(
            _mask_kernel_3d, value=value, append=append, num_channels=C
        )
        out = pl.pallas_call(
            kernel,
            out_shape=jax.ShapeDtypeStruct((B, out_c, n128, _LANE), x.dtype),
            grid_spec=pltpu.PrefetchScalarGridSpec(
                num_scalar_prefetch=0,
                grid=(B, n_sp),
                in_specs=[
                    pl.BlockSpec((pl.Squeezed(), C, ts, _LANE),
                                 lambda b, s: (b, 0, s, 0)),
                    pl.BlockSpec((pl.Squeezed(), ts, _LANE),
                                 lambda b, s: (b, s, 0)),
                ],
                out_specs=pl.BlockSpec((pl.Squeezed(), out_c, ts, _LANE),
                                       lambda b, s: (b, 0, s, 0)),
            ),
            compiler_params=pltpu.CompilerParams(
                dimension_semantics=("parallel", "parallel"),
                vmem_limit_bytes=_vmem_limit(used),
            ),
            input_output_aliases=io_alias,
        )(x3, s3)
        return out.reshape(B, out_c, H, W)

    # ---------------- 2-D lane-dense fallback ----------------
    # Padded (8,128)-tiled footprint: (1, T) S pads to st sublanes, x/out pad
    # C up to a sublane-tile multiple.
    pad_c = _round_up(C, st)
    pad_s = st
    pad_oc = _round_up(out_c, st)
    col_bytes = (pad_c + pad_s + pad_oc) * itemsize
    max_t = _BLOCK_VMEM_BUDGET // (2 * col_bytes)
    max_t = max(_LANE, (max_t // _LANE) * _LANE)
    t = spatial if spatial <= max_t else max_t
    if B == 1:
        half = _round_up(_cdiv(spatial, 2), _LANE)
        if half < spatial:
            t = min(t, half)
    n_sp = _cdiv(spatial, t)

    pad_t = _round_up(t, _LANE)
    used = 2 * (pad_c + pad_s + pad_oc) * pad_t * itemsize

    x2 = x.reshape(B, C, spatial)            # bitcast reshape (no copy)
    s2 = S.reshape(B, 1, spatial)

    kernel = functools.partial(
        _mask_kernel_2d, value=value, append=append, num_channels=C
    )
    out = pl.pallas_call(
        kernel,
        out_shape=jax.ShapeDtypeStruct((B, out_c, spatial), x.dtype),
        grid_spec=pltpu.PrefetchScalarGridSpec(
            num_scalar_prefetch=0,
            grid=(B, n_sp),
            in_specs=[
                pl.BlockSpec((pl.Squeezed(), C, t), lambda b, s: (b, 0, s)),
                pl.BlockSpec((pl.Squeezed(), 1, t), lambda b, s: (b, 0, s)),
            ],
            out_specs=pl.BlockSpec((pl.Squeezed(), out_c, t),
                                   lambda b, s: (b, 0, s)),
        ),
        compiler_params=pltpu.CompilerParams(
            dimension_semantics=("parallel", "parallel"),
            vmem_limit_bytes=_vmem_limit(used),
        ),
        input_output_aliases=io_alias,
    )(x2, s2)
    return out.reshape(B, out_c, H, W)


def mask_layer_2d_ref(x, S, *, value, append):
    """Pure-JAX reference for correctness checking."""
    if S.ndim == 3:
        S = S[:, None, :, :]
    S = S.astype(x.dtype)
    out = x * S + value * (1.0 - S)
    if append:
        out = jnp.concatenate([out, S], axis=1)
    return out


if __name__ == "__main__":
    key = jax.random.PRNGKey(0)
    kx, ks, kx2, ks2, kx3, ks3 = jax.random.split(key, 6)

    value = 0.5

    # Case 1: (B, H, W) mask, spatial multiple of 128 -> 3-D dense-tile path.
    B, C, H, W = 2, 4, 16, 16
    x = jax.random.normal(kx, (B, C, H, W), dtype=jnp.float32)
    S = (jax.random.uniform(ks, (B, H, W)) > 0.5).astype(jnp.float32)

    out = jax.block_until_ready(mask_layer_2d(x, S, value=value, append=True))
    ref = mask_layer_2d_ref(x, S, value=value, append=True)
    assert out.shape == (B, C + 1, H, W), out.shape
    assert jnp.allclose(out, ref, atol=1e-6, rtol=1e-6), "mismatch (case 1, append=True)"

    out2 = jax.block_until_ready(mask_layer_2d(x, S, value=value, append=False))
    ref2 = mask_layer_2d_ref(x, S, value=value, append=False)
    assert out2.shape == (B, C, H, W)
    assert jnp.allclose(out2, ref2, atol=1e-6, rtol=1e-6), "mismatch (case 1, append=False)"

    # Case 2: spatial not a multiple of 128 -> 2-D fallback path, (B,1,H,W) mask.
    B2, C2, H2, W2 = 2, 3, 10, 10
    x_b = jax.random.normal(kx2, (B2, C2, H2, W2), dtype=jnp.float32)
    S_b = (jax.random.uniform(ks2, (B2, 1, H2, W2)) > 0.5).astype(jnp.float32)

    out3 = jax.block_until_ready(mask_layer_2d(x_b, S_b, value=value, append=True))
    ref3 = mask_layer_2d_ref(x_b, S_b, value=value, append=True)
    assert out3.shape == (B2, C2 + 1, H2, W2)
    assert jnp.allclose(out3, ref3, atol=1e-6, rtol=1e-6), "mismatch (case 2)"

    # Case 3: B == 1 -> spatial axis forced to >= 2 parallel blocks (megacore),
    # with a ragged last sublane block (n128 = 12, Ts = 8).
    B3, C3, H3, W3 = 1, 2, 24, 64
    x_c = jax.random.normal(kx3, (B3, C3, H3, W3), dtype=jnp.float32)
    S_c = (jax.random.uniform(ks3, (B3, H3, W3)) > 0.5).astype(jnp.float32)

    out4 = jax.block_until_ready(mask_layer_2d(x_c, S_c, value=value, append=True))
    ref4 = mask_layer_2d_ref(x_c, S_c, value=value, append=True)
    assert out4.shape == (B3, C3 + 1, H3, W3)
    assert jnp.allclose(out4, ref4, atol=1e-6, rtol=1e-6), "mismatch (case 3)"

    # TODO(synk): integer x dtypes would need explicit promotion rules to match
    # PyTorch exactly; only floating-point x is supported here.
    print("KERNEL_OK")
</pallas_src>

<mosaic_0001>
module attributes {stable_mosaic.version = 11 : i64} {
  func.func @_mask_kernel_3d(%arg0: i32, %arg1: i32, %arg2: memref<1x4x2x128xf32, #tpu.memory_space<vmem>>, %arg3: memref<1x2x128xf32, #tpu.memory_space<vmem>>, %arg4: memref<1x5x2x128xf32, #tpu.memory_space<vmem>>) attributes {dimension_semantics = [#tpu.dimension_semantics<parallel>, #tpu.dimension_semantics<parallel>], iteration_bounds = array<i64: 2, 1>, scalar_prefetch = 0 : i64, scratch_operands = 0 : i64, tpu.core_type = #tpu.core_type<tc>, window_params = [{transform_indices = @transform_0, window_bounds = array<i64: 1, 4, 2, 128>}, {transform_indices = @transform_1, window_bounds = array<i64: 1, 2, 128>}, {transform_indices = @transform_2, window_bounds = array<i64: 1, 5, 2, 128>}]} {
    %c0 = arith.constant 0 : index
    %c0_0 = arith.constant 0 : index
    %c0_1 = arith.constant 0 : index
    %c0_2 = arith.constant 0 : index
    %0 = vector.load %arg2[%c0, %c0_0, %c0_1, %c0_2] : memref<1x4x2x128xf32, #tpu.memory_space<vmem>>, vector<1x4x2x128xf32>
    %1 = vector.shape_cast %0 : vector<1x4x2x128xf32> to vector<4x2x128xf32>
    %c0_3 = arith.constant 0 : index
    %c0_4 = arith.constant 0 : index
    %c0_5 = arith.constant 0 : index
    %2 = vector.load %arg3[%c0_3, %c0_4, %c0_5] : memref<1x2x128xf32, #tpu.memory_space<vmem>>, vector<1x2x128xf32>
    %3 = vector.shape_cast %2 : vector<1x2x128xf32> to vector<2x128xf32>
    %4 = vector.shape_cast %3 : vector<2x128xf32> to vector<1x2x128xf32>
    %5 = vector.broadcast %4 : vector<1x2x128xf32> to vector<4x2x128xf32>
    %6 = arith.mulf %1, %5 : vector<4x2x128xf32>
    %cst = arith.constant 1.000000e+00 : f32
    %7 = vector.broadcast %cst : f32 to vector<1x2x128xf32>
    %8 = arith.subf %7, %4 : vector<1x2x128xf32>
    %cst_6 = arith.constant 5.000000e-01 : f32
    %9 = vector.broadcast %cst_6 : f32 to vector<1x2x128xf32>
    %10 = arith.mulf %9, %8 : vector<1x2x128xf32>
    %11 = vector.broadcast %10 : vector<1x2x128xf32> to vector<4x2x128xf32>
    %12 = arith.addf %6, %11 : vector<4x2x128xf32>
    %c0_7 = arith.constant 0 : index
    %c0_8 = arith.constant 0 : index
    %c0_9 = arith.constant 0 : index
    %c0_10 = arith.constant 0 : index
    %13 = vector.load %arg4[%c0_7, %c0_8, %c0_9, %c0_10] : memref<1x5x2x128xf32, #tpu.memory_space<vmem>>, vector<1x4x2x128xf32>
    %14 = vector.shape_cast %13 : vector<1x4x2x128xf32> to vector<4x2x128xf32>
    %15 = vector.shape_cast %12 : vector<4x2x128xf32> to vector<1x4x2x128xf32>
    tpu.vector_store %arg4[%c0_7, %c0_8, %c0_9, %c0_10], %15 {strides = array<i32>} : memref<1x5x2x128xf32, #tpu.memory_space<vmem>>, vector<1x4x2x128xf32>,
    %c0_11 = arith.constant 0 : index
    %c4 = arith.constant 4 : index
    %c0_12 = arith.constant 0 : index
    %c0_13 = arith.constant 0 : index
    %16 = vector.load %arg4[%c0_11, %c4, %c0_12, %c0_13] : memref<1x5x2x128xf32, #tpu.memory_space<vmem>>, vector<1x1x2x128xf32>
    %17 = vector.shape_cast %16 : vector<1x1x2x128xf32> to vector<1x2x128xf32>
    %18 = vector.shape_cast %4 : vector<1x2x128xf32> to vector<1x1x2x128xf32>
    tpu.vector_store %arg4[%c0_11, %c4, %c0_12, %c0_13], %18 {strides = array<i32>} : memref<1x5x2x128xf32, #tpu.memory_space<vmem>>, vector<1x1x2x128xf32>,
    return
  }
  func.func @transform_0(%arg0: i32, %arg1: i32) -> (i32, i32, i32, i32) {
    %c0_i32 = arith.constant 0 : i32
    %c0_i32_0 = arith.constant 0 : i32
    %c0_i32_1 = arith.constant 0 : i32
    return %arg0, %c0_i32, %arg1, %c0_i32_0 : i32, i32, i32, i32
  }
  func.func @transform_1(%arg0: i32, %arg1: i32) -> (i32, i32, i32) {
    %c0_i32 = arith.constant 0 : i32
    %c0_i32_0 = arith.constant 0 : i32
    return %arg0, %arg1, %c0_i32 : i32, i32, i32
  }
  func.func @transform_2(%arg0: i32, %arg1: i32) -> (i32, i32, i32, i32) {
    %c0_i32 = arith.constant 0 : i32
    %c0_i32_0 = arith.constant 0 : i32
    %c0_i32_1 = arith.constant 0 : i32
    return %arg0, %c0_i32, %arg1, %c0_i32_0 : i32, i32, i32, i32
  }
}

</mosaic_0001>

<bundles_post_ra>
// kernel: tpu_custom_call.1
= control target key start
LH: loop header
LB: loop body
LE: loop exit
PB: predicated region body
PF: predicated region fallthrough
CT: control target
= control target key end

     0   :  { %7 = vsyncpa [#allocation3], 0  ;;  %s766_s0 = inlined_call_operand.hbm [shape: f32[2,4,2,128], index: 0, kind: input, shape index: {}]   ;;  %s767_s1 = inlined_call_operand.hbm [shape: f32[2,2,128], index: 1, kind: input, shape index: {}]   ;;  %s768_s2 = inlined_call_operand.hbm [shape: f32[2,5,2,128], index: 2, kind: output, shape index: {}]  }
   0x1   :  { %9 = vsyncpa [#allocation3 + $0x1], 0 }
   0x2   :  { %10 = vsyncpa [#allocation6], 0 }
   0x3   :  { %12 = vsyncpa [#allocation6 + $0x1], 0 }
   0x4   :  { %13 = vsyncpa [#allocation4], 0 }
   0x5   :  { %15 = vsyncpa [#allocation4 + $0x1], 0  ;;  %s627_s9 = smov 0   ;;  %s629_s10 = smov 0  }
   0x6   :  { %s631_s11 = smov 0   ;;  %s633_s12 = smov 0  }
   0x7   :  { %s635_s13 = smov 0   ;;  %s637_s14 = smov 0  }
   0x8 LB: > { %s370_s15 = sadd.s32 4294967295, %s606_s14   ;;  %s371_s16 = sadd.s32 4294967294, %s606_s14   ;;  %s606_s14 = sphi %s637_s14, %s21_s14   ;;  %s602_s13 = sphi %s635_s13, %s778_s13   ;;  %s598_s12 = sphi %s633_s12, %s777_s12   ;;  %s594_s11 = sphi %s631_s11, %s776_s11   ;;  %s590_s10 = sphi %s629_s10, %s775_s10   ;;  %s586_s9 = sphi %s627_s9, %s774_s9  }
   0x9   : > { %s33_s17 = sadd.s32 1, %s602_s13  ;;  %s42_s18 = sadd.s32 1, %s594_s11 }
   0xa   : > { %p35_p0 = scmp.ge.s32.totalorder %s33_s17, 2  ;;  %p49_p1 = scmp.ne.s32.totalorder %s594_s11, %s590_s10 }
   0xb   : > { %p50_p2 = scmp.eq.s32.totalorder %s606_s14, 0  ;;  %p55_p3 = scmp.ne.s32.totalorder %s590_s10, %s586_s9 }
   0xc   : > { %s780_s17 = smov (%p35_p0, %s33_s17), 0  ;;  %p56_p5 = scmp.eq.s32.totalorder %s370_s15, 0 }
   0xd   : > { %p668_p4 = por %p50_p2, %p49_p1  ;;  %s37_s20 = ssub.s32 %s602_s13, %s780_s17 }
   0xe   : > { %p109_p6 = scmp.eq.s32.totalorder %s370_s15, 1  ;;  %p40_p7 = scmp.eq.s32.totalorder %s37_s20, 0 }
   0xf   : > { %p674_p8 = por %p56_p5, %p55_p3  ;;  %p115_p10 = scmp.eq.s32.totalorder %s371_s16, 1 }
  0x10   : > { %p678_p9 = por %p109_p6, %p49_p1  ;;  %p373_p12 = scmp.ge.s32.totalorder %s606_s14, 2 }
  0x11   : > { %s683_s23 = scalar_select %p40_p7, %s594_s11, %s42_s18  }
  0x12   : > { %p685_p11 = por %p115_p10, %p55_p3  ;;  %p406_p13 = scmp.lt.s32.totalorder %s606_s14, 2 }
  0x13   : > { %s135_s25 = sand.u32 1, %s594_s11   ;;  %s386_s27 = sshll.u32 %s602_s13, 3 }
  0x14   : > { %s374_s26 = sshll.u32 %s135_s25, 3  ;;  %s145_s30 = scalar_lea.hbm %s766_s0, %s386_s27 }
  0x15   : > { %s139_s3 = scalar_lea.vmem [#allocation2], %s374_s26  ;;  %s146_s5 = sshll.u32 %s145_s30, 4  ;;  %s147_s5 = int_to_ptr.hbm [resolvable:$true] %s146_s5 }
  0x16   : > { %s148_s4 = sshll.u32 %s139_s3, 4  ;;  %p698_p0 = pnand %p406_p13, %p668_p4  ;;  %s149_s4 = int_to_ptr.vmem [resolvable:$true] %s148_s4 }
  0x17   : > { %p379_p1 = scmp.ge.s32.totalorder %s606_s14, 1  ;;  %s136_s7 = scalar_lea.sflag [#allocation3], %s135_s25 }
  0x18   : > { %s608_s8 = smov 32   ;;  %s609_s15 = smov 2  }
  0x19   : > { %398 = dma.hbm_to_vmem [thread:$0]  (!%p698_p0), %s147_s5, 128, %s149_s4, %s136_s7, %s608_s8, %s608_s8, %s609_s15  }
  0x1a   : > { %p176_p2 = scmp.lt.s32.totalorder %s606_s14, 3  ;;  %s377_s16 = sshll.u32 %s135_s25, 1 }
  0x1b   : > { %s378_s18 = sshll.u32 %s602_s13, 1  ;;  %s162_s27 = scalar_lea.vmem [#allocation5], %s377_s16 }
  0x1c   : > { %p177_p3 = pnand %p379_p1, %p176_p2  ;;  %s167_s19 = scalar_lea.hbm %s767_s1, %s378_s18 }
  0x1d   : > { %s171_s28 = sshll.u32 %s162_s27, 4  ;;  %s169_s29 = sshll.u32 %s167_s19, 4  ;;  %s172_s28 = int_to_ptr.vmem [resolvable:$true] %s171_s28  ;;  %s170_s29 = int_to_ptr.hbm [resolvable:$true] %s169_s29 }
  0x1e   : > { %s159_s30 = scalar_lea.sflag [#allocation6], %s135_s25  ;;  %180 = sbr.rel (%p177_p3) target bundleno = 57 (0x39), region = 28 }
  0x1f   : > { %401 = dma.hbm_to_vmem [thread:$0]  (!%p698_p0), %s170_s29, 32, %s172_s28, %s159_s30  }
  0x20   : > { %s713_s3 = sand.u32 (!%p177_p3), 1, %s590_s10  }
  0x21   : > { %s380_s4 = sshll.u32 (!%p177_p3), %s713_s3, 3  ;;  %s183_s5 = scalar_lea.sflag (!%p177_p3), [#allocation3], %s713_s3 }
  0x22   : > { %s186_s7 = scalar_lea.vmem (!%p177_p3), [#allocation2], %s380_s4 }
  0x23   : > { %573 = dma.done.wait (%p674_p8), %s183_s5, 128  }
  0x24   : > { %575 = vsyncadd (%p674_p8), %s183_s5, 4294967168  ;;  %s381_s25 = sshll.u32 %s713_s3, 1  ;;  %s193_s6 = scalar_lea.sflag [#allocation6], %s713_s3 }
  0x25   : > { %s196_s8 = scalar_lea.vmem [#allocation5], %s381_s25 }
  0x26   : > { %577 = dma.done.wait (%p674_p8), %s193_s6, 32  }
  0x27   : > { %579 = vsyncadd (%p674_p8), %s193_s6, 4294967264  ;;  %s387_s15 = smul.u32 10, %s713_s3  ;;  %v223_v0 = vld [vmem:[%s186_s7] sm:$0x3]  ;;  %v227_v1 = vld [vmem:[%s196_s8] sm:$0x3] }
  0x28   : > { %s388_s16 = smul.u32 10, %s598_s12  ;;  %v224_v2 = vld [vmem:[%s186_s7 + $0x2] sm:$0x3]  ;;  %v228_v3 = vmul.f32 %v227_v1, %v223_v0  ;;  %v232_v4 = vsub.f32 1.0, %v227_v1  ;;  %v225_v6 = vld [vmem:[%s186_s7 + $0x4] sm:$0x3] }
  0x29   : > { %s222_s18 = scalar_lea.vmem [#allocation7], %s387_s15  ;;  %v229_v5 = vmul.f32 %v227_v1, %v224_v2  ;;  %v230_v7 = vmul.f32 %v227_v1, %v225_v6  ;;  %v226_v8 = vld [vmem:[%s186_s7 + $0x6] sm:$0x3]  ;;  %s245_s27 = scalar_lea.sflag [#allocation4], %s713_s3 }
  0x2a   : > { %382 = vst [vmem:[%s222_s18 + $0x8] sm:$0x3] %v227_v1  ;;  %s257_s21 = scalar_lea.hbm %s768_s2, %s388_s16  ;;  %v233_v9 = vmul.f32 0.5, %v232_v4  ;;  %v231_v10 = vmul.f32 %v227_v1, %v226_v8  ;;  %s258_s12 = sshll.u32 %s222_s18, 4  ;;  %s259_s12 = int_to_ptr.vmem [resolvable:$true] %s258_s12 }
  0x2b   : > { %s260_s19 = sshll.u32 %s257_s21, 4  ;;  %s540_s5 = scalar_lea.hbm %s768_s2, 20  ;;  %s261_s19 = int_to_ptr.hbm [resolvable:$true] %s260_s19 }
  0x2c   : > { %v234_v11 = vadd.f32 %v233_v9, %v228_v3  ;;  %v235_v12 = vadd.f32 %v233_v9, %v229_v5  ;;  %v236_v13 = vadd.f32 %v233_v9, %v230_v7  ;;  %v237_v14 = vadd.f32 %v233_v9, %v231_v10  ;;  %s534_s28 = sshra.s32 %s261_s19, 4  ;;  %s535_s28 = int_to_ptr.hbm [resolvable:$true] %s534_s28 }
  0x2d   : > { %s536_s29 = scalar_lea.hbm %s535_s28, 10  ;;  %p541_p7 = scmp.lt.s32.totalorder %s535_s28, %s768_s2 }
  0x2e   : > { %238 = vst [vmem:[%s222_s18] sm:$0x3] %v234_v11  ;;  %p537_p4 = scmp.ne.s32.totalorder %s535_s28, %s536_s29  ;;  %p542_p8 = scmp.lt.s32.totalorder %s540_s5, %s536_s29 }
  0x2f   : > { %239 = vst [vmem:[%s222_s18 + $0x2] sm:$0x3] %v235_v12 }
  0x30   : > { %240 = vst [vmem:[%s222_s18 + $0x4] sm:$0x3] %v236_v13  ;;  %p538_p5 = pnand %p537_p4, %p678_p9  ;;  %p543_p10 = por %p542_p8, %p541_p7 }
  0x31   : > { %241 = vst [vmem:[%s222_s18 + $0x6] sm:$0x3] %v237_v14 }
  0x32   : > { %p539_p6 = pneg %p538_p5 }
  0x34   : > { %p544_p13 = pnand %p543_p10, %p539_p6 }
  0x36   : > { %547 = shalt.err (!%p544_p13)
}
  0x37   : > { %s610_s3 = smov 32   ;;  %s611_s6 = smov 2  }
  0x38   : > { %393 = dma.vmem_to_hbm [thread:$0]  (%p678_p9), %s259_s12, 160, %s261_s19, %s245_s27, %s610_s3, %s610_s3, %s611_s6  }
  0x39 PF: > { %s275_s8 = sand.u32 1, %s586_s9   ;;  %p403_p0 = pnand %p373_p12, %p685_p11 }
  0x3a   : > { %s276_s15 = scalar_lea.sflag [#allocation4], %s275_s8 }
  0x3b   : > { %p404_p1 = pneg %p403_p0 }
  0x3d   : > { %581 = dma.done.wait (%p404_p1), %s276_s15, 160  }
  0x3e   : > { %583 = vsyncadd (%p404_p1), %s276_s15, 4294967136  ;;  %s21_s14 = sadd.s32 1, %s606_s14   ;;  %s774_s9 = smov %s590_s10 }
  0x3f   : > { %p18_p2 = scmp.ge.s32.totalorder %s21_s14, 4   ;;  %s775_s10 = smov %s594_s11 }
  0x40   : > { %s776_s11 = smov %s683_s23  ;;  %s777_s12 = smov %s602_s13 }
  0x41   : > { %s778_s13 = smov %s780_s17  ;;  %20 = sbr.rel (!%p18_p2) target bundleno = 8 (0x8), region = 87 }
  0x46   :  { %282 = vsyncpa [#allocation3], 1 }
  0x47   :  { %284 = vsyncpa [#allocation3 + $0x1], 1 }
  0x48   :  { %285 = vsyncpa [#allocation6], 1 }
  0x49   :  { %287 = vsyncpa [#allocation6 + $0x1], 1 }
  0x4a   :  { %288 = vsyncpa [#allocation4], 1 }
  0x4b   :  { %290 = vsyncpa [#allocation4 + $0x1], 1 }

</bundles_post_ra>
